<compile_context>
chip_gen: v7x
topology: tpu7x:2x2x1
jax: 0.10.0
libtpu: 0.0.40
codegen_flags: <defaults>
</compile_context>

<pallas_src>
import functools
import math

import jax
import jax.numpy as jnp
from jax.experimental import pallas as pl
from jax.experimental.pallas import tpu as pltpu

_VMEM_LIMIT_BYTES = 48 * 1024 * 1024   # explicit; headroom on v7x (64 MiB)
_F_PAD = 128                           # lane-dense padded hidden width


def _round_up(x, m):
    return ((x + m - 1) // m) * m


def _pad2(x, rows, cols):
    return jnp.pad(x, ((0, rows - x.shape[0]), (0, cols - x.shape[1])))


# ---------------------------------------------------------------------------
# Kernel 1: initial feature transform  H1 = X @ W0   (lane-dense output)
# ---------------------------------------------------------------------------
def _transform_kernel(x_ref, w_ref, o_ref):
    o_ref[...] = jnp.dot(x_ref[...], w_ref[...],
                         preferred_element_type=jnp.float32).astype(o_ref.dtype)


def feature_transform(x, w, *, tm):
    n, fin = x.shape
    fout = w.shape[1]
    return pl.pallas_call(
        _transform_kernel,
        out_shape=jax.ShapeDtypeStruct((n, fout), jnp.bfloat16),
        grid=(n // tm,),
        in_specs=[
            pl.BlockSpec((tm, fin), lambda i: (i, 0)),     # X row block
            pl.BlockSpec((fin, fout), lambda i: (0, 0)),   # W (resident)
        ],
        out_specs=pl.BlockSpec((tm, fout), lambda i: (i, 0)),
        compiler_params=pltpu.CompilerParams(
            dimension_semantics=("parallel",),
            vmem_limit_bytes=_VMEM_LIMIT_BYTES),
        cost_estimate=pl.CostEstimate(
            flops=int(2 * n * fin * fout), transcendentals=0,
            bytes_accessed=int(2 * (x.size + w.size + n * fout))),
    )(x, w)


# ---------------------------------------------------------------------------
# Kernel 2: GCN aggregation  Z = A_hat @ H + b, optional ReLU, optionally
# fused next-layer feature transform  H_next = ReLU(Z) @ W_next.
#   grid = (N/TM, N/TK); K is the reduction over source nodes.
# ---------------------------------------------------------------------------
def _gcn_agg_kernel(*refs, apply_relu, fuse_next):
    if fuse_next:
        a_ref, h_ref, b_ref, wn_ref, o_ref, acc_ref = refs
    else:
        a_ref, h_ref, b_ref, o_ref, acc_ref = refs
    k = pl.program_id(1)

    @pl.when(k == 0)
    def _():
        acc_ref[...] = jnp.zeros_like(acc_ref)

    acc_ref[...] += jnp.dot(a_ref[...], h_ref[...],
                            preferred_element_type=jnp.float32)

    @pl.when(k == pl.num_programs(1) - 1)
    def _():
        z = acc_ref[...] + b_ref[...]
        if apply_relu:
            z = jnp.maximum(z, 0.0)
        if fuse_next:   # next layer's X @ W, once per row tile (no k redundancy)
            z = jnp.dot(z.astype(jnp.bfloat16), wn_ref[...],
                        preferred_element_type=jnp.float32)
        o_ref[...] = z.astype(o_ref.dtype)


def gcn_agg_layer(a, h, b, w_next, *, apply_relu, tm, tk):
    n = a.shape[0]
    f = h.shape[1]
    fuse_next = w_next is not None
    operands = [a, h, b]
    in_specs = [
        pl.BlockSpec((tm, tk), lambda i, k: (i, k)),   # A_hat tile (streamed)
        pl.BlockSpec((tk, f), lambda i, k: (k, 0)),    # H block
        pl.BlockSpec((1, f), lambda i, k: (0, 0)),     # bias (resident)
    ]
    if fuse_next:
        operands.append(w_next)
        in_specs.append(pl.BlockSpec((f, f), lambda i, k: (0, 0)))  # W_next
    flops = int(2 * n * n * f + (2 * n * f * f if fuse_next else 0))
    bytes_accessed = int(2 * a.size + 2 * (n // tm) * h.size + 2 * n * f)
    return pl.pallas_call(
        functools.partial(_gcn_agg_kernel, apply_relu=apply_relu,
                          fuse_next=fuse_next),
        out_shape=jax.ShapeDtypeStruct((n, f), jnp.bfloat16),
        grid=(n // tm, n // tk),
        in_specs=in_specs,
        out_specs=pl.BlockSpec((tm, f), lambda i, k: (i, 0)),
        scratch_shapes=[pltpu.VMEM((tm, f), jnp.float32)],
        compiler_params=pltpu.CompilerParams(
            dimension_semantics=("parallel", "arbitrary"),
            vmem_limit_bytes=_VMEM_LIMIT_BYTES),
        cost_estimate=pl.CostEstimate(flops=flops, transcendentals=0,
                                      bytes_accessed=bytes_accessed),
    )(*operands)


# ---------------------------------------------------------------------------
# Kernel 3: global_mean_pool (P @ H) + Linear1(+folded BN) + ReLU + Linear2.
#   grid = (N/TK,) reduction over nodes; lane-dense (G_pad, 128) output.
# ---------------------------------------------------------------------------
def _pool_head_kernel(p_ref, h_ref, lw0_ref, lb0_ref, lw1_ref, lb1_ref,
                      o_ref, acc_ref):
    k = pl.program_id(0)

    @pl.when(k == 0)
    def _():
        acc_ref[...] = jnp.zeros_like(acc_ref)

    acc_ref[...] += jnp.dot(p_ref[...], h_ref[...],
                            preferred_element_type=jnp.float32)

    @pl.when(k == pl.num_programs(0) - 1)
    def _():
        g = acc_ref[...]                       # pooled graph features [G_pad, F]
        # dropout: eval mode -> identity
        z = jnp.dot(g.astype(jnp.bfloat16), lw0_ref[...],
                    preferred_element_type=jnp.float32) + lb0_ref[...]
        z = jnp.maximum(z, 0.0)                # Linear1 + folded BN + ReLU
        o_ref[...] = (jnp.dot(z.astype(jnp.bfloat16), lw1_ref[...],
                              preferred_element_type=jnp.float32)
                      + lb1_ref[...])          # final Linear (lane-padded)


def pool_head(pool_p, h, lw0_p, lb0_p, lw1_p, lb1_p, *, tk):
    g_pad, n = pool_p.shape
    f = h.shape[1]
    flops = int(2 * n * g_pad * f + 4 * g_pad * f * f)
    bytes_accessed = int(2 * (pool_p.size + h.size) + 4 * g_pad * f)
    return pl.pallas_call(
        _pool_head_kernel,
        out_shape=jax.ShapeDtypeStruct((g_pad, _F_PAD), jnp.float32),
        grid=(n // tk,),
        in_specs=[
            pl.BlockSpec((g_pad, tk), lambda k: (0, k)),   # pooling matrix P
            pl.BlockSpec((tk, f), lambda k: (k, 0)),       # conv3 output block
            pl.BlockSpec((f, _F_PAD), lambda k: (0, 0)),   # Linear1 (BN folded)
            pl.BlockSpec((1, _F_PAD), lambda k: (0, 0)),
            pl.BlockSpec((f, _F_PAD), lambda k: (0, 0)),   # Linear2 (zero-padded)
            pl.BlockSpec((1, _F_PAD), lambda k: (0, 0)),
        ],
        out_specs=pl.BlockSpec((g_pad, _F_PAD), lambda k: (0, 0)),
        scratch_shapes=[pltpu.VMEM((g_pad, f), jnp.float32)],
        compiler_params=pltpu.CompilerParams(
            dimension_semantics=("arbitrary",),
            vmem_limit_bytes=_VMEM_LIMIT_BYTES),
        cost_estimate=pl.CostEstimate(flops=flops, transcendentals=0,
                                      bytes_accessed=bytes_accessed),
    )(pool_p, h, lw0_p, lb0_p, lw1_p, lb1_p)


# ---------------------------------------------------------------------------
# End-to-end eval-mode forward.
# ---------------------------------------------------------------------------
def gcn_forward(a_norm, x, pool, params, *, tm=128, tk=128):
    """a_norm [N,N], x [N,Fin], pool [G,N]; params are f32 torch-equivalents."""
    n = x.shape[0]
    g = pool.shape[0]
    n_pad = _round_up(n, math.lcm(tm, tk))
    g_pad = _round_up(max(g, 8), 8)
    f = _F_PAD

    bf16 = jnp.bfloat16
    # zero-padding is exact: padded rows/cols of A_hat and P contribute nothing
    a_p = _pad2(a_norm, n_pad, n_pad).astype(bf16)
    x_p = _pad2(x, n_pad, x.shape[1]).astype(bf16)
    p_p = _pad2(pool, g_pad, n_pad).astype(bf16)

    # lane-dense (128-wide) padded conv weights / biases (pads are zero -> exact)
    w0_p = _pad2(params["w0"], params["w0"].shape[0], f).astype(bf16)
    w1_p = _pad2(params["w1"], f, f).astype(bf16)
    w2_p = _pad2(params["w2"], f, f).astype(bf16)
    b0_p = _pad2(params["b0"], 1, f)
    b1_p = _pad2(params["b1"], 1, f)
    b2_p = _pad2(params["b2"], 1, f)

    # fold eval-mode BatchNorm1d into Linear1 (affine composition)
    eps = 1e-5
    scale = params["bn_g"] * jax.lax.rsqrt(params["bn_v"] + eps)     # [1, hid]
    lw0_f = params["lw0"] * scale
    lb0_f = (params["lb0"] - params["bn_m"]) * scale + params["bn_b"]
    lw0_p = _pad2(lw0_f, f, f).astype(bf16)
    lb0_p = _pad2(lb0_f, 1, f)
    lw1_p = _pad2(params["lw1"], f, f).astype(bf16)
    lb1_p = _pad2(params["lb1"], 1, f)

    # conv1 transform, then aggregation kernels with the *next* layer's
    # transform fused into their finalize (computed once per row tile).
    h = feature_transform(x_p, w0_p, tm=tm)                                 # X @ W0
    h = gcn_agg_layer(a_p, h, b0_p, w1_p, apply_relu=True, tm=tm, tk=tk)    # relu(conv1) @ W1
    h = gcn_agg_layer(a_p, h, b1_p, w2_p, apply_relu=True, tm=tm, tk=tk)    # relu(conv2) @ W2
    h = gcn_agg_layer(a_p, h, b2_p, None, apply_relu=False, tm=tm, tk=tk)   # conv3 (no ReLU)

    out_pad = pool_head(p_p, h, lw0_p, lb0_p, lw1_p, lb1_p, tk=tk)
    return out_pad[:g, :1]


if __name__ == "__main__":
    key = jax.random.PRNGKey(0)

    # Module hyper-params (conv_layers[-1] == lin_layers[0], lin_layers[-1] == 1)
    conv_layers = [4, 32, 32, 32]
    lin_layers = [32, 16, 1]

    G = 2                       # graphs in the batch
    nodes_per_graph = 128
    N = G * nodes_per_graph     # 256 nodes -> 2x2 grid of 128x128 A tiles

    # --- deterministic graph: two 128-node undirected rings ---
    src_list, dst_list = [], []
    for gidx in range(G):
        base = gidx * nodes_per_graph
        for i in range(nodes_per_graph):
            u = base + i
            v = base + (i + 1) % nodes_per_graph
            src_list += [u, v]
            dst_list += [v, u]
    src = jnp.array(src_list, dtype=jnp.int32)
    dst = jnp.array(dst_list, dtype=jnp.int32)
    batch = jnp.repeat(jnp.arange(G, dtype=jnp.int32), nodes_per_graph)

    # GCNConv normalization: A_hat = D^-1/2 (A + I) D^-1/2   (glue, plain JAX)
    A = jnp.zeros((N, N), jnp.float32).at[src, dst].set(1.0)
    A_sl = A + jnp.eye(N, dtype=jnp.float32)
    deg = A_sl.sum(axis=1)
    dinv = jax.lax.rsqrt(deg)
    a_norm = dinv[:, None] * A_sl * dinv[None, :]

    # global_mean_pool matrix P [G, N]
    one_hot = (batch[None, :] == jnp.arange(G)[:, None]).astype(jnp.float32)
    pool = one_hot / one_hot.sum(axis=1, keepdims=True)

    # --- deterministic parameters ---
    keys = jax.random.split(key, 11)

    def init_w(k, fan_in, fan_out):
        return (jax.random.normal(k, (fan_in, fan_out), jnp.float32)
                / jnp.sqrt(jnp.float32(fan_in)))

    def init_b(k, fan_out):
        return 0.01 * jax.random.normal(k, (1, fan_out), jnp.float32)

    x = jax.random.normal(keys[0], (N, conv_layers[0]), jnp.float32)

    params = dict(
        # GCNConv weights [in, out] and biases [1, out]
        w0=init_w(keys[1], conv_layers[0], conv_layers[1]), b0=init_b(keys[2], conv_layers[1]),
        w1=init_w(keys[3], conv_layers[1], conv_layers[2]), b1=init_b(keys[4], conv_layers[2]),
        w2=init_w(keys[5], conv_layers[2], conv_layers[3]), b2=init_b(keys[6], conv_layers[3]),
        # Linear 1 (32 -> 16)
        lw0=init_w(keys[7], lin_layers[0], lin_layers[1]), lb0=init_b(keys[8], lin_layers[1]),
        # BatchNorm1d(16) eval-mode params / running stats (folded at trace time)
        bn_g=jnp.ones((1, lin_layers[1]), jnp.float32),
        bn_b=jnp.zeros((1, lin_layers[1]), jnp.float32),
        bn_m=jnp.zeros((1, lin_layers[1]), jnp.float32),
        bn_v=jnp.ones((1, lin_layers[1]), jnp.float32),
        # Linear 2 (16 -> 1)
        lw1=init_w(keys[9], lin_layers[1], lin_layers[2]), lb1=init_b(keys[10], lin_layers[2]),
    )

    out = gcn_forward(a_norm, x, pool, params)
    jax.block_until_ready(out)
    assert out.shape == (G, 1) and out.dtype == jnp.float32
    print("KERNEL_OK")
</pallas_src>

<mosaic_0001>
module attributes {stable_mosaic.version = 11 : i64} {
  func.func @_transform_kernel(%arg0: i32, %arg1: memref<128x4xbf16, #tpu.memory_space<vmem>>, %arg2: memref<4x128xbf16, #tpu.memory_space<vmem>>, %arg3: memref<128x128xbf16, #tpu.memory_space<vmem>>) attributes {dimension_semantics = [#tpu.dimension_semantics<parallel>], iteration_bounds = array<i64: 2>, scalar_prefetch = 0 : i64, scratch_operands = 0 : i64, tpu.core_type = #tpu.core_type<tc>, window_params = [{transform_indices = @transform_0, window_bounds = array<i64: 128, 4>}, {pipeline_mode = #tpu.pipeline_mode<synchronous>, transform_indices = @transform_1, window_bounds = array<i64: 4, 128>}, {transform_indices = @transform_2, window_bounds = array<i64: 128, 128>}]} {
    %c0 = arith.constant 0 : index
    %c0_0 = arith.constant 0 : index
    %0 = vector.load %arg1[%c0, %c0_0] : memref<128x4xbf16, #tpu.memory_space<vmem>>, vector<128x4xbf16>
    %c0_1 = arith.constant 0 : index
    %c0_2 = arith.constant 0 : index
    %1 = vector.load %arg2[%c0_1, %c0_2] : memref<4x128xbf16, #tpu.memory_space<vmem>>, vector<4x128xbf16>
    %cst = arith.constant dense<0.000000e+00> : vector<128x128xf32>
    %2 = tpu.matmul %0, %1, %cst {dimension_numbers = #tpu.dot_dimension_numbers<[1], [0], [0], [1], [0, 0, 1, 1], [], []>} : vector<128x4xbf16>, vector<4x128xbf16>, vector<128x128xf32> -> vector<128x128xf32>
    %3 = arith.truncf %2 : vector<128x128xf32> to vector<128x128xbf16>
    %c0_3 = arith.constant 0 : index
    %c0_4 = arith.constant 0 : index
    %4 = vector.load %arg3[%c0_3, %c0_4] : memref<128x128xbf16, #tpu.memory_space<vmem>>, vector<128x128xbf16>
    tpu.vector_store %arg3[%c0_3, %c0_4], %3 {strides = array<i32>} : memref<128x128xbf16, #tpu.memory_space<vmem>>, vector<128x128xbf16>,
    return
  }
  func.func @transform_0(%arg0: i32) -> (i32, i32) {
    %c0_i32 = arith.constant 0 : i32
    %c0_i32_0 = arith.constant 0 : i32
    return %arg0, %c0_i32 : i32, i32
  }
  func.func @transform_1(%arg0: i32) -> (i32, i32) {
    %c0_i32 = arith.constant 0 : i32
    %c0_i32_0 = arith.constant 0 : i32
    %c0_i32_1 = arith.constant 0 : i32
    return %c0_i32, %c0_i32_0 : i32, i32
  }
  func.func @transform_2(%arg0: i32) -> (i32, i32) {
    %c0_i32 = arith.constant 0 : i32
    %c0_i32_0 = arith.constant 0 : i32
    return %arg0, %c0_i32 : i32, i32
  }
}

</mosaic_0001>

<bundles_post_ra>
// kernel: tpu_custom_call.1
= control target key start
LH: loop header
LB: loop body
LE: loop exit
PB: predicated region body
PF: predicated region fallthrough
CT: control target
= control target key end

     0   :  { %7 = vsyncpa [#allocation3], 0  ;;  %s872_s0 = inlined_call_operand.vmem [shape: bf16[256,4], index: 0, kind: input, shape index: {}]   ;;  %s873_s1 = inlined_call_operand.vmem [shape: bf16[4,128], index: 1, kind: input, shape index: {}]   ;;  %s874_s2 = inlined_call_operand.hbm [shape: bf16[256,128], index: 2, kind: output, shape index: {}]  }
   0x1   :  { %9 = vsyncpa [#allocation3 + $0x1], 0  ;;  %s755_s9 = smov 0   ;;  %s757_s10 = smov 0  }
   0x2   :  { %s759_s11 = smov 0   ;;  %s761_s12 = smov 0  }
   0x3 LB: > { %s776_s13 = sadd.s32 4294967295, %s735_s12   ;;  %s485_s14 = sadd.s32 4294967294, %s735_s12   ;;  %s735_s12 = sphi %s761_s12, %s880_s12   ;;  %s731_s11 = sphi %s759_s11, %s879_s11   ;;  %s727_s10 = sphi %s757_s10, %s878_s10   ;;  %s723_s9 = sphi %s755_s9, %s877_s9  }
   0x4   : > { %s780_s15 = sadd.s32 1, %s735_s12   ;;  %s69_s16 = sadd.s32 1, %s731_s11 }
   0x5   : > { %s66_s17 = ssub.s32 %s735_s12, %s780_s15  ;;  %p79_p0 = scmp.ne.s32.totalorder %s731_s11, %s727_s10 }
   0x6   : > { %p67_p1 = scmp.eq.s32.totalorder %s66_s17, 0  ;;  %p80_p2 = scmp.eq.s32.totalorder %s776_s13, 1 }
   0x7   : > { %p85_p3 = scmp.ne.s32.totalorder %s727_s10, %s723_s9  ;;  %p86_p4 = scmp.eq.s32.totalorder %s485_s14, 1 }
   0x8   : > { %s791_s18 = scalar_select %p67_p1, %s731_s11, %s69_s16  }
   0x9   : > { %p793_p5 = por %p80_p2, %p79_p0  ;;  %p797_p6 = por %p86_p4, %p85_p3 }
   0xa   : > { %p488_p7 = scmp.ge.s32.totalorder %s735_s12, 1  ;;  %p116_p8 = scmp.lt.s32.totalorder %s735_s12, 3 }
   0xc   : > { %p117_p9 = pnand %p488_p7, %p116_p8 }
   0xd   : > { %v162_v0 = vld [vmem:[%s873_s1] sm:$0x3] (!%p117_p9)  ;;  %vm228_vm0 = vcmask (!%p117_p9), 1041408   ;;  %s490_s23 = sshll.u32 (!%p117_p9), %s776_s13, 4  ;;  %vm203_vm1 = vcmask (!%p117_p9), 31744   ;;  %s135_s28 = sand.u32 (!%p117_p9), 1, %s727_s10  }
   0xe   : > { %120 = sbr.rel (%p117_p9) target bundleno = 267 (0x10b), region = 28  ;;  %622 = vmatprep.subr.msk.bf16.mxu0 (!%p117_p9), %vm228_vm0, %v162_v0  ;;  %623 = vmatprep.subr.msk.bf16.mxu1 (!%p117_p9), %vm228_vm0, %v162_v0  ;;  %v230_v1 = vsel (!%p117_p9), %vm228_vm0, %v162_v0, 0  ;;  %p139_p10 = scmp.lt.s32.totalorder (!%p117_p9), %s490_s23, 31 }
   0xf   : > { %603 = vmatpush3.bf16.msra.mxu0 (!%p117_p9), %v230_v1  ;;  %621 = vmatpush3.bf16.msra.mxu1 (!%p117_p9), %v230_v1  ;;  %s489_s29 = sshll.u32 (!%p117_p9), %s135_s28, 6  ;;  %s545_s3 = sshll.u32 (!%p117_p9), %s776_s13, 10 }
  0x10   : > { %s137_s30 = scalar_lea.vmem (!%p117_p9), [#allocation2], %s489_s29  ;;  %s825_s7 = scalar_lea.hbm (!%p117_p9), %s874_s2, %s545_s3 }
  0x11   : > { %s423_s4 = sshll.u32 (!%p117_p9), %s137_s30, 4  ;;  %s831_s8 = scalar_lea.sflag (!%p117_p9), [#allocation3], %s135_s28  ;;  %s827_s4 = int_to_ptr.vmem [resolvable:$true] %s423_s4 }
  0x12   : > { %s673_s13 = scalar_lea.vmem (!%p117_p9), %s827_s4, 1024  ;;  %s737_s14 = smov (!%p117_p9), [#allocation2]  }
  0x13   : > { %p674_p11 = scmp.ne.s32.totalorder (!%p117_p9), %s827_s4, %s673_s13  ;;  %s677_s16 = sshll.u32 (!%p117_p9), %s737_s14, 4  ;;  %s678_s16 = int_to_ptr.vmem [resolvable:$false] %s677_s16 }
  0x14   : > { %s679_s17 = scalar_lea.vmem (!%p117_p9), %s678_s16, 2048  ;;  %p680_p0 = scmp.lt.s32.totalorder (!%p117_p9), %s827_s4, %s678_s16 }
  0x15   : > { %s882_s23 = smov (!%p139_p10, %s490_s23), 31  ;;  %p675_p12 = pnand %p674_p11, %p793_p5 }
  0x16   : > { %s491_s24 = sshll.u32 %s882_s23, 2  ;;  %p681_p1 = scmp.lt.s32.totalorder %s679_s17, %s673_s13 }
  0x17   : > { %s142_s27 = scalar_lea.vmem %s872_s0, %s491_s24  ;;  %p676_p13 = pneg %p675_p12 }
  0x18   : > { %v665_v2 = vld [vmem:[%s142_s27] sm:$0xff]   ;;  %v667_v4 = vld [vmem:[%s142_s27 + $0x8] sm:$0xff]   ;;  %v669_v6 = vld [vmem:[%s142_s27 + $0x10] sm:$0xff]   ;;  %p682_p2 = por %p681_p1, %p680_p0 }
  0x19   : > { %v666_v3 = vld [vmem:[%s142_s27 + $0x20] sm:$0xff]   ;;  %604 = vmatprep.mubr.msk.bf16.mxu0 %vm203_vm1, %v665_v2  ;;  %v668_v5 = vld [vmem:[%s142_s27 + $0x28] sm:$0xff]   ;;  %v670_v7 = vld [vmem:[%s142_s27 + $0x30] sm:$0xff]  }
  0x1a   : > { %612 = vmatprep.mubr.msk.bf16.mxu1 %vm203_vm1, %v666_v3  ;;  %605 = vmatmul.mubr.msk.bf16.vlgmr.msra.gmra.mrb[0].mxu0 %vm203_vm1, %v667_v4  ;;  %v671_v8 = vld [vmem:[%s142_s27 + $0x18] sm:$0xff]   ;;  %p683_p3 = pnand %p682_p2, %p676_p13 }
  0x1b   : > { %613 = vmatmul.mubr.msk.bf16.vlgmr.msra.gmra.mrb[0].mxu1 %vm203_vm1, %v668_v5  ;;  %608 = vmatprep.mubr.msk.bf16.mxu0 %vm203_vm1, %v669_v6  ;;  %v672_v9 = vld [vmem:[%s142_s27 + $0x38] sm:$0xff]  }
  0x1c   : > { %616 = vmatprep.mubr.msk.bf16.mxu1 %vm203_vm1, %v670_v7 }
  0x22   : > { %609 = vmatmul.mubr.msk.bf16.gmra.mrb[4].mxu0 %vm203_vm1, %v671_v8 }
  0x23   : > { %617 = vmatmul.mubr.msk.bf16.gmra.mrb[4].mxu1 %vm203_vm1, %v672_v9 }
  0xed   : > { %v606_v10 = vpop.f32.mrb[0].mxu0 }
  0xee   : > { %v614_v11 = vpop.f32.mrb[0].mxu1  ;;  %v266_v12 = vpop.f32.mrb[1].mxu0 }
  0xef   : > { %v298_v13 = vpop.f32.mrb[1].mxu1  ;;  %v607_v14 = vpop.f32.mrb[2].mxu0 }
  0xf0   : > { %v554_v15 = vpack.c.bf16 %v607_v14, %v606_v10  ;;  %v615_v16 = vpop.f32.mrb[2].mxu1  ;;  %v269_v17 = vpop.f32.mrb[3].mxu0 }
  0xf1   : > { %v574_v18 = vpack.c.bf16 %v615_v16, %v614_v11  ;;  %v549_v19 = vpack.c.bf16 %v269_v17, %v266_v12  ;;  %v301_v20 = vpop.f32.mrb[3].mxu1 }
  0xf2   : > { %586 = vst [vmem:[%s137_s30 + $0x8] sm:$0xff] %v554_v15   ;;  %v569_v21 = vpack.c.bf16 %v301_v20, %v298_v13 }
  0xf3   : > { %590 = vst [vmem:[%s137_s30 + $0x28] sm:$0xff] %v574_v18   ;;  %550 = vst [vmem:[%s137_s30] sm:$0xff] %v549_v19  }
  0xf4   : > { %589 = vst [vmem:[%s137_s30 + $0x20] sm:$0xff] %v569_v21  }
  0xf5   : > { %v610_v22 = vpop.f32.mrb[4].mxu0 }
  0xf6   : > { %v618_v23 = vpop.f32.mrb[4].mxu1  ;;  %v282_v24 = vpop.f32.mrb[5].mxu0 }
  0xf7   : > { %v314_v25 = vpop.f32.mrb[5].mxu1  ;;  %v611_v26 = vpop.f32.mrb[6].mxu0 }
  0xf8   : > { %v564_v27 = vpack.c.bf16 %v611_v26, %v610_v22  ;;  %v619_v28 = vpop.f32.mrb[6].mxu1  ;;  %v285_v29 = vpop.f32.mrb[7].mxu0 }
  0xf9   : > { %v584_v30 = vpack.c.bf16 %v619_v28, %v618_v23  ;;  %v559_v31 = vpack.c.bf16 %v285_v29, %v282_v24  ;;  %v317_v32 = vpop.f32.mrb[7].mxu1 }
  0xfa   : > { %588 = vst [vmem:[%s137_s30 + $0x18] sm:$0xff] %v564_v27   ;;  %v579_v33 = vpack.c.bf16 %v317_v32, %v314_v25 }
  0xfb   : > { %592 = vst [vmem:[%s137_s30 + $0x38] sm:$0xff] %v584_v30   ;;  %587 = vst [vmem:[%s137_s30 + $0x10] sm:$0xff] %v559_v31  }
  0xfc   : > { %591 = vst [vmem:[%s137_s30 + $0x30] sm:$0xff] %v579_v33  }
  0xfd   : > { %686 = shalt.err (!%p683_p3)
}
  0xfe   : > { %s687_s21 = scalar_lea.hbm %s825_s7, 1024  ;;  %s691_s24 = scalar_lea.hbm %s874_s2, 2048 }
  0xff   : > { %p688_p4 = scmp.ne.s32.totalorder %s825_s7, %s687_s21  ;;  %p692_p9 = scmp.lt.u32.totalorder %s825_s7, %s874_s2 }
 0x100   : > { %p693_p10 = scmp.lt.u32.totalorder %s691_s24, %s687_s21  ;;  %p695_p12 = scmp.lt.u32.totalorder %s687_s21, %s825_s7 }
 0x101   : > { %p689_p7 = pnand %p688_p4, %p793_p5 }
 0x102   : > { %p694_p11 = por %p693_p10, %p692_p9 }
 0x103   : > { %p690_p8 = pneg %p689_p7 }
 0x104   : > { %p696_p13 = por %p695_p12, %p694_p11 }
 0x106   : > { %p697_p0 = pnand %p696_p13, %p690_p8 }
 0x108   : > { %700 = shalt.err (!%p697_p0)
}
 0x109   : > { %s738_s27 = smov 64   ;;  %s739_s28 = smov 4  }
 0x10a   : > { %624 = dma.vmem_to_hbm [thread:$0]  (%p793_p5), %s827_s4, 1024, %s825_s7, %s831_s8, %s738_s27, %s738_s27, %s739_s28  }
 0x10b PF: > { %p630_p1 = scmp.ge.s32.totalorder %s735_s12, 2  ;;  %s438_s29 = sand.u32 1, %s723_s9  }
 0x10c   : > { %s439_s30 = scalar_lea.sflag [#allocation3], %s438_s29 }
 0x10d   : > { %p627_p2 = pnand %p630_p1, %p797_p6 }
 0x10f   : > { %718 = dma.done.wait (!%p627_p2), %s439_s30, 1024  }
 0x110   : > { %720 = vsyncadd (!%p627_p2), %s439_s30, 4294966272  ;;  %p12_p3 = scmp.ge.s32.totalorder %s780_s15, 4   ;;  %s877_s9 = smov %s727_s10 }
 0x111   : > { %s878_s10 = smov %s731_s11  ;;  %s879_s11 = smov %s791_s18 }
 0x112   : > { %s880_s12 = smov %s780_s15  ;;  %14 = sbr.rel (!%p12_p3) target bundleno = 3 (0x3), region = 63 }
 0x119   :  { %444 = vsyncpa [#allocation3], 1 }
 0x11a   :  { %446 = vsyncpa [#allocation3 + $0x1], 1 }

</bundles_post_ra>
